<compile_context>
chip_gen: v7x
topology: tpu7x:2x2x1
jax: 0.10.0
libtpu: 0.0.40
codegen_flags: <defaults>
</compile_context>

<pallas_src>
import functools

import jax
import jax.numpy as jnp
from jax.experimental import pallas as pl
from jax.experimental.pallas import tpu as pltpu

_INV_SQRT2 = 0.7071067811865475  # 1/sqrt(2), hoisted constant for exact (erf) GELU


def _round_up(n: int, m: int) -> int:
    return ((n + m - 1) // m) * m


def ffn_sublayer_kernel(x_ref, gamma_ref, beta_ref, w1_ref, b1_ref, w2_ref, b2_ref,
                        o_ref, acc_ref, *, eps: float, dff_chunk: int):
    # x_ref: (tm, D) row tile.  gamma/beta/b1/b2: pre-cast f32 (1, ...) rows.
    # w1_ref: (D, Dff), w2_ref: (Dff, D), resident in their native dtype (f32 or bf16).
    # acc_ref: (tm, D) f32 VMEM scratch accumulator for the second matmul.
    x = x_ref[...].astype(jnp.float32)
    Dff = w1_ref.shape[1]
    n_chunks = Dff // dff_chunk
    compute_dtype = w1_ref.dtype  # bf16 -> fast MXU path; f32 -> exact path

    # --- LayerNorm over the last (lane) axis, f32, matches nn.LayerNorm(d_model) ---
    mean = jnp.mean(x, axis=-1, keepdims=True)
    var = jnp.mean(jnp.square(x - mean), axis=-1, keepdims=True)
    inv = jax.lax.rsqrt(var + eps)
    xn = (x - mean) * inv * gamma_ref[...] + beta_ref[...]
    xn_c = xn.astype(compute_dtype)

    # --- FeedForward: W1 -> exact GELU -> W2, chunked over d_ff, f32 accumulation ---
    acc_ref[...] = jnp.zeros_like(acc_ref)
    for c in range(n_chunks):  # static chunk count; bounds the (tm, dff_chunk) live tile
        lo = c * dff_chunk
        hi = lo + dff_chunk
        h = jnp.dot(xn_c, w1_ref[:, lo:hi],
                    preferred_element_type=jnp.float32) + b1_ref[:, lo:hi]
        # nn.GELU() default is the exact (erf-based) formulation.
        a = 0.5 * h * (1.0 + jax.lax.erf(h * _INV_SQRT2))
        acc_ref[...] += jnp.dot(a.astype(compute_dtype), w2_ref[lo:hi, :],
                                preferred_element_type=jnp.float32)

    # --- bias, residual in f32, single cast on store ---
    o_ref[...] = (x + acc_ref[...] + b2_ref[...]).astype(o_ref.dtype)


def ffn_sublayer(x, gamma, beta, w1, b1, w2, b2, *, eps=1e-5, tm=256,
                 dff_chunk=None, weight_dtype=None):
    """x: (batch, seq, d_model). w1: (d_model, d_ff), w2: (d_ff, d_model).

    weight_dtype: optionally cast W1/W2 (e.g. jnp.bfloat16) for the fast MXU path;
    accumulation, LayerNorm, GELU and the residual stay in f32.
    """
    B, S, D = x.shape
    Dff = w1.shape[1]
    N = B * S

    if weight_dtype is not None:
        w1 = w1.astype(weight_dtype)
        w2 = w2.astype(weight_dtype)

    # Small params: cast to f32 once here instead of on every grid step in the kernel.
    gamma2 = gamma.reshape(1, D).astype(jnp.float32)
    beta2 = beta.reshape(1, D).astype(jnp.float32)
    b1_2 = b1.reshape(1, Dff).astype(jnp.float32)
    b2_2 = b2.reshape(1, D).astype(jnp.float32)

    # MXU-friendly row tile; pad N up to a tile multiple instead of asserting divisibility.
    tm = min(tm, _round_up(N, 8))
    N_pad = _round_up(N, tm)
    x2 = x.reshape(N, D)
    if N_pad != N:
        x2 = jnp.pad(x2, ((0, N_pad - N), (0, 0)))

    # d_ff chunking bounds the (tm, dff_chunk) f32 intermediate (VMEM/vreg pressure).
    if dff_chunk is None:
        dff_chunk = 512 if (Dff > 512 and Dff % 512 == 0) else Dff
    assert Dff % dff_chunk == 0, "d_ff must be divisible by dff_chunk"

    kernel = functools.partial(ffn_sublayer_kernel, eps=eps, dff_chunk=dff_chunk)

    out2 = pl.pallas_call(
        kernel,
        out_shape=jax.ShapeDtypeStruct((N_pad, D), x.dtype),
        grid_spec=pltpu.PrefetchScalarGridSpec(
            num_scalar_prefetch=0,
            grid=(N_pad // tm,),
            in_specs=[
                pl.BlockSpec((tm, D), lambda i: (i, 0)),      # x rows (pipelined)
                pl.BlockSpec((1, D), lambda i: (0, 0)),       # gamma (resident)
                pl.BlockSpec((1, D), lambda i: (0, 0)),       # beta  (resident)
                pl.BlockSpec((D, Dff), lambda i: (0, 0)),     # W1    (resident)
                pl.BlockSpec((1, Dff), lambda i: (0, 0)),     # b1    (resident)
                pl.BlockSpec((Dff, D), lambda i: (0, 0)),     # W2    (resident)
                pl.BlockSpec((1, D), lambda i: (0, 0)),       # b2    (resident)
            ],
            out_specs=pl.BlockSpec((tm, D), lambda i: (i, 0)),
            scratch_shapes=[pltpu.VMEM((tm, D), jnp.float32)],  # f32 accumulator
        ),
        compiler_params=pltpu.CompilerParams(
            dimension_semantics=("parallel",),
            vmem_limit_bytes=64 * 1024 * 1024,
        ),
    )(x2, gamma2, beta2, w1, b1_2, w2, b2_2)

    if N_pad != N:
        out2 = out2[:N]
    return out2.reshape(B, S, D)


def ffn_sublayer_ref(x, gamma, beta, w1, b1, w2, b2, eps=1e-5):
    xf = x.astype(jnp.float32)
    mean = jnp.mean(xf, axis=-1, keepdims=True)
    var = jnp.mean(jnp.square(xf - mean), axis=-1, keepdims=True)
    xn = (xf - mean) * jax.lax.rsqrt(var + eps) * gamma + beta
    h = xn @ w1 + b1
    a = jax.nn.gelu(h, approximate=False)
    y = a @ w2 + b2
    return (xf + y).astype(x.dtype)


if __name__ == "__main__":
    # Small shapes consistent with the module (d_model plays the 512 role, d_ff the 2048
    # role); 128/256-multiples on the matmul dims keep the MXU fully fed.
    batch, seq, d_model, d_ff = 2, 8, 256, 512
    key = jax.random.PRNGKey(0)
    kx, kg, kb, kw1, kb1, kw2, kb2 = jax.random.split(key, 7)

    x = jax.random.normal(kx, (batch, seq, d_model), dtype=jnp.float32)
    gamma = 1.0 + 0.01 * jax.random.normal(kg, (d_model,), dtype=jnp.float32)
    beta = 0.01 * jax.random.normal(kb, (d_model,), dtype=jnp.float32)
    w1 = jax.random.normal(kw1, (d_model, d_ff), dtype=jnp.float32) / jnp.sqrt(d_model)
    b1 = 0.01 * jax.random.normal(kb1, (d_ff,), dtype=jnp.float32)
    w2 = jax.random.normal(kw2, (d_ff, d_model), dtype=jnp.float32) / jnp.sqrt(d_ff)
    b2 = 0.01 * jax.random.normal(kb2, (d_model,), dtype=jnp.float32)

    ref = ffn_sublayer_ref(x, gamma, beta, w1, b1, w2, b2)

    # 1) f32 weights: exact path, tight tolerance vs the reference.
    out = jax.block_until_ready(ffn_sublayer(x, gamma, beta, w1, b1, w2, b2))
    assert out.shape == (batch, seq, d_model)
    assert jnp.allclose(out, ref, atol=1e-3, rtol=1e-3), "f32 mismatch vs reference"

    # 2) bf16 weights (fast MXU path, f32 accumulation): loose tolerance vs the f32 ref.
    out_bf16 = jax.block_until_ready(
        ffn_sublayer(x, gamma, beta, w1, b1, w2, b2, weight_dtype=jnp.bfloat16))
    assert out_bf16.shape == (batch, seq, d_model)
    assert bool(jnp.all(jnp.isfinite(out_bf16)))
    assert float(jnp.max(jnp.abs(out_bf16 - ref))) < 0.1, "bf16 path diverged from reference"

    # TODO(synk): F.dropout (dropout_p > 0, training mode) is not implemented; the module
    # default dropout_p=0.0 makes it a no-op in this forward pass.
    print("KERNEL_OK")
</pallas_src>

<mosaic_0001>
module attributes {stable_mosaic.version = 11 : i64} {
  func.func @ffn_sublayer_kernel(%arg0: i32, %arg1: memref<16x256xf32, #tpu.memory_space<vmem>>, %arg2: memref<1x256xf32, #tpu.memory_space<vmem>>, %arg3: memref<1x256xf32, #tpu.memory_space<vmem>>, %arg4: memref<256x512xf32, #tpu.memory_space<vmem>>, %arg5: memref<1x512xf32, #tpu.memory_space<vmem>>, %arg6: memref<512x256xf32, #tpu.memory_space<vmem>>, %arg7: memref<1x256xf32, #tpu.memory_space<vmem>>, %arg8: memref<16x256xf32, #tpu.memory_space<vmem>>, %arg9: memref<16x256xf32, #tpu.memory_space<vmem>>) attributes {dimension_semantics = [#tpu.dimension_semantics<parallel>], iteration_bounds = array<i64: 1>, scalar_prefetch = 0 : i64, scratch_operands = 1 : i64, tpu.core_type = #tpu.core_type<tc>, window_params = [{transform_indices = @transform_0, window_bounds = array<i64: 16, 256>}, {pipeline_mode = #tpu.pipeline_mode<synchronous>, transform_indices = @transform_1, window_bounds = array<i64: 1, 256>}, {pipeline_mode = #tpu.pipeline_mode<synchronous>, transform_indices = @transform_2, window_bounds = array<i64: 1, 256>}, {pipeline_mode = #tpu.pipeline_mode<synchronous>, transform_indices = @transform_3, window_bounds = array<i64: 256, 512>}, {pipeline_mode = #tpu.pipeline_mode<synchronous>, transform_indices = @transform_4, window_bounds = array<i64: 1, 512>}, {pipeline_mode = #tpu.pipeline_mode<synchronous>, transform_indices = @transform_5, window_bounds = array<i64: 512, 256>}, {pipeline_mode = #tpu.pipeline_mode<synchronous>, transform_indices = @transform_6, window_bounds = array<i64: 1, 256>}, {transform_indices = @transform_7, window_bounds = array<i64: 16, 256>}]} {
    %c0 = arith.constant 0 : index
    %c0_0 = arith.constant 0 : index
    %0 = vector.load %arg1[%c0, %c0_0] : memref<16x256xf32, #tpu.memory_space<vmem>>, vector<16x256xf32>
    %cst = arith.constant dense<0.000000e+00> : vector<16xf32>
    %1 = vector.multi_reduction <add>, %0, %cst [1] : vector<16x256xf32> to vector<16xf32>
    %2 = vector.shape_cast %1 : vector<16xf32> to vector<16x1xf32>
    %cst_1 = arith.constant 2.560000e+02 : f32
    %3 = vector.broadcast %cst_1 : f32 to vector<16x1xf32>
    %4 = arith.divf %2, %3 : vector<16x1xf32>
    %5 = vector.broadcast %4 : vector<16x1xf32> to vector<16x256xf32>
    %6 = arith.subf %0, %5 : vector<16x256xf32>
    %7 = arith.mulf %6, %6 : vector<16x256xf32>
    %cst_2 = arith.constant dense<0.000000e+00> : vector<16xf32>
    %8 = vector.multi_reduction <add>, %7, %cst_2 [1] : vector<16x256xf32> to vector<16xf32>
    %9 = vector.shape_cast %8 : vector<16xf32> to vector<16x1xf32>
    %cst_3 = arith.constant 2.560000e+02 : f32
    %10 = vector.broadcast %cst_3 : f32 to vector<16x1xf32>
    %11 = arith.divf %9, %10 : vector<16x1xf32>
    %cst_4 = arith.constant 9.99999974E-6 : f32
    %12 = vector.broadcast %cst_4 : f32 to vector<16x1xf32>
    %13 = arith.addf %11, %12 : vector<16x1xf32>
    %14 = math.rsqrt %13 : vector<16x1xf32>
    %15 = vector.broadcast %4 : vector<16x1xf32> to vector<16x256xf32>
    %16 = arith.subf %0, %15 : vector<16x256xf32>
    %17 = vector.broadcast %14 : vector<16x1xf32> to vector<16x256xf32>
    %18 = arith.mulf %16, %17 : vector<16x256xf32>
    %c0_5 = arith.constant 0 : index
    %c0_6 = arith.constant 0 : index
    %19 = vector.load %arg2[%c0_5, %c0_6] : memref<1x256xf32, #tpu.memory_space<vmem>>, vector<1x256xf32>
    %20 = vector.broadcast %19 : vector<1x256xf32> to vector<16x256xf32>
    %21 = arith.mulf %18, %20 : vector<16x256xf32>
    %c0_7 = arith.constant 0 : index
    %c0_8 = arith.constant 0 : index
    %22 = vector.load %arg3[%c0_7, %c0_8] : memref<1x256xf32, #tpu.memory_space<vmem>>, vector<1x256xf32>
    %23 = vector.broadcast %22 : vector<1x256xf32> to vector<16x256xf32>
    %24 = arith.addf %21, %23 : vector<16x256xf32>
    %cst_9 = arith.constant 0.000000e+00 : f32
    %25 = vector.broadcast %cst_9 : f32 to vector<16x256xf32>
    %c0_10 = arith.constant 0 : index
    %c0_11 = arith.constant 0 : index
    %26 = vector.load %arg9[%c0_10, %c0_11] : memref<16x256xf32, #tpu.memory_space<vmem>>, vector<16x256xf32>
    tpu.vector_store %arg9[%c0_10, %c0_11], %25 {strides = array<i32>} : memref<16x256xf32, #tpu.memory_space<vmem>>, vector<16x256xf32>,
    %c0_12 = arith.constant 0 : index
    %c0_13 = arith.constant 0 : index
    %27 = vector.load %arg4[%c0_12, %c0_13] : memref<256x512xf32, #tpu.memory_space<vmem>>, vector<256x512xf32>
    %cst_14 = arith.constant dense<0.000000e+00> : vector<16x512xf32>
    %28 = tpu.matmul %24, %27, %cst_14 {dimension_numbers = #tpu.dot_dimension_numbers<[1], [0], [0], [1], [0, 0, 1, 1], [], []>} : vector<16x256xf32>, vector<256x512xf32>, vector<16x512xf32> -> vector<16x512xf32>
    %c0_15 = arith.constant 0 : index
    %c0_16 = arith.constant 0 : index
    %29 = vector.load %arg5[%c0_15, %c0_16] : memref<1x512xf32, #tpu.memory_space<vmem>>, vector<1x512xf32>
    %30 = vector.broadcast %29 : vector<1x512xf32> to vector<16x512xf32>
    %31 = arith.addf %28, %30 : vector<16x512xf32>
    %cst_17 = arith.constant 5.000000e-01 : f32
    %32 = vector.broadcast %cst_17 : f32 to vector<16x512xf32>
    %33 = arith.mulf %32, %31 : vector<16x512xf32>
    %cst_18 = arith.constant 0.707106769 : f32
    %34 = vector.broadcast %cst_18 : f32 to vector<16x512xf32>
    %35 = arith.mulf %31, %34 : vector<16x512xf32>
    %36 = math.erf %35 : vector<16x512xf32>
    %cst_19 = arith.constant 1.000000e+00 : f32
    %37 = vector.broadcast %cst_19 : f32 to vector<16x512xf32>
    %38 = arith.addf %37, %36 : vector<16x512xf32>
    %39 = arith.mulf %33, %38 : vector<16x512xf32>
    %c0_20 = arith.constant 0 : index
    %c0_21 = arith.constant 0 : index
    %40 = vector.load %arg9[%c0_20, %c0_21] : memref<16x256xf32, #tpu.memory_space<vmem>>, vector<16x256xf32>
    %c0_22 = arith.constant 0 : index
    %c0_23 = arith.constant 0 : index
    %41 = vector.load %arg6[%c0_22, %c0_23] : memref<512x256xf32, #tpu.memory_space<vmem>>, vector<512x256xf32>
    %cst_24 = arith.constant dense<0.000000e+00> : vector<16x256xf32>
    %42 = tpu.matmul %39, %41, %cst_24 {dimension_numbers = #tpu.dot_dimension_numbers<[1], [0], [0], [1], [0, 0, 1, 1], [], []>} : vector<16x512xf32>, vector<512x256xf32>, vector<16x256xf32> -> vector<16x256xf32>
    %43 = arith.addf %40, %42 : vector<16x256xf32>
    %c0_25 = arith.constant 0 : index
    %c0_26 = arith.constant 0 : index
    %44 = vector.load %arg9[%c0_25, %c0_26] : memref<16x256xf32, #tpu.memory_space<vmem>>, vector<16x256xf32>
    tpu.vector_store %arg9[%c0_25, %c0_26], %43 {strides = array<i32>} : memref<16x256xf32, #tpu.memory_space<vmem>>, vector<16x256xf32>,
    %c0_27 = arith.constant 0 : index
    %c0_28 = arith.constant 0 : index
    %45 = vector.load %arg9[%c0_27, %c0_28] : memref<16x256xf32, #tpu.memory_space<vmem>>, vector<16x256xf32>
    %46 = arith.addf %0, %45 : vector<16x256xf32>
    %c0_29 = arith.constant 0 : index
    %c0_30 = arith.constant 0 : index
    %47 = vector.load %arg7[%c0_29, %c0_30] : memref<1x256xf32, #tpu.memory_space<vmem>>, vector<1x256xf32>
    %48 = vector.broadcast %47 : vector<1x256xf32> to vector<16x256xf32>
    %49 = arith.addf %46, %48 : vector<16x256xf32>
    %c0_31 = arith.constant 0 : index
    %c0_32 = arith.constant 0 : index
    %50 = vector.load %arg8[%c0_31, %c0_32] : memref<16x256xf32, #tpu.memory_space<vmem>>, vector<16x256xf32>
    tpu.vector_store %arg8[%c0_31, %c0_32], %49 {strides = array<i32>} : memref<16x256xf32, #tpu.memory_space<vmem>>, vector<16x256xf32>,
    return
  }
  func.func @transform_0(%arg0: i32) -> (i32, i32) {
    %c0_i32 = arith.constant 0 : i32
    %c0_i32_0 = arith.constant 0 : i32
    return %arg0, %c0_i32 : i32, i32
  }
  func.func @transform_1(%arg0: i32) -> (i32, i32) {
    %c0_i32 = arith.constant 0 : i32
    %c0_i32_0 = arith.constant 0 : i32
    %c0_i32_1 = arith.constant 0 : i32
    return %c0_i32, %c0_i32_0 : i32, i32
  }
  func.func @transform_2(%arg0: i32) -> (i32, i32) {
    %c0_i32 = arith.constant 0 : i32
    %c0_i32_0 = arith.constant 0 : i32
    %c0_i32_1 = arith.constant 0 : i32
    return %c0_i32, %c0_i32_0 : i32, i32
  }
  func.func @transform_3(%arg0: i32) -> (i32, i32) {
    %c0_i32 = arith.constant 0 : i32
    %c0_i32_0 = arith.constant 0 : i32
    %c0_i32_1 = arith.constant 0 : i32
    return %c0_i32, %c0_i32_0 : i32, i32
  }
  func.func @transform_4(%arg0: i32) -> (i32, i32) {
    %c0_i32 = arith.constant 0 : i32
    %c0_i32_0 = arith.constant 0 : i32
    %c0_i32_1 = arith.constant 0 : i32
    return %c0_i32, %c0_i32_0 : i32, i32
  }
  func.func @transform_5(%arg0: i32) -> (i32, i32) {
    %c0_i32 = arith.constant 0 : i32
    %c0_i32_0 = arith.constant 0 : i32
    %c0_i32_1 = arith.constant 0 : i32
    return %c0_i32, %c0_i32_0 : i32, i32
  }
  func.func @transform_6(%arg0: i32) -> (i32, i32) {
    %c0_i32 = arith.constant 0 : i32
    %c0_i32_0 = arith.constant 0 : i32
    %c0_i32_1 = arith.constant 0 : i32
    return %c0_i32, %c0_i32_0 : i32, i32
  }
  func.func @transform_7(%arg0: i32) -> (i32, i32) {
    %c0_i32 = arith.constant 0 : i32
    %c0_i32_0 = arith.constant 0 : i32
    return %arg0, %c0_i32 : i32, i32
  }
}

</mosaic_0001>

<bundles_post_ra>
// kernel: tpu_custom_call.1
= control target key start
LH: loop header
LB: loop body
LE: loop exit
PB: predicated region body
PF: predicated region fallthrough
CT: control target
= control target key end

     0   :  { %12 = vsyncpa [#allocation4], 0  ;;  %s1598_s0 = inlined_call_operand.hbm [shape: f32[16,256], index: 0, kind: input, shape index: {}]   ;;  %s1599_s1 = inlined_call_operand.hbm [shape: f32[1,256], index: 1, kind: input, shape index: {}]   ;;  %s1600_s2 = inlined_call_operand.hbm [shape: f32[1,256], index: 2, kind: input, shape index: {}]   ;;  %s1601_s3 = inlined_call_operand.hbm [shape: f32[256,512], index: 3, kind: input, shape index: {}]   ;;  %s1602_s4 = inlined_call_operand.hbm [shape: f32[1,512], index: 4, kind: input, shape index: {}]   ;;  %s1603_s5 = inlined_call_operand.hbm [shape: f32[512,256], index: 5, kind: input, shape index: {}]   ;;  %s1604_s6 = inlined_call_operand.hbm [shape: f32[1,256], index: 6, kind: input, shape index: {}]   ;;  %s1605_s7 = inlined_call_operand.hbm [shape: f32[16,256], index: 7, kind: output, shape index: {}]  }
   0x1   :  { %13 = vsyncpa [#allocation7], 0 }
   0x2   :  { %14 = vsyncpa [#allocation10], 0 }
   0x3   :  { %15 = vsyncpa [#allocation13], 0 }
   0x4   :  { %16 = vsyncpa [#allocation5], 0  ;;  %s1355_s24 = smov [#allocation6]   ;;  %s1356_s26 = smov [#allocation9]  }
   0x5   :  { %s35_s25 = sshll.u32 %s1355_s24, 4  ;;  %s54_s27 = sshll.u32 %s1356_s26, 4  ;;  %s36_s25 = int_to_ptr.vmem [resolvable:$true] %s35_s25  ;;  %s1407_s27 = int_to_ptr.vmem [resolvable:$true] %s54_s27 }
   0x6   :  { %s1169_s30 = scalar_lea.hbm %s1599_s1, 32 }
   0x7   :  { %p1170_p0 = scmp.ne.s32.totalorder %s1599_s1, %s1169_s30  ;;  %p1173_p1 = scmp.lt.u32.totalorder %s1169_s30, %s1599_s1 }
   0x9   :  { %p1175_p2 = pnand %p1173_p1, %p1170_p0 }
   0xb   :  { %1178 = shalt.err (!%p1175_p2)
}
   0xc   :  { %s1179_s12 = scalar_lea.vmem %s36_s25, 32  ;;  %p1184_p4 = scmp.lt.s32.totalorder %s36_s25, %s36_s25 }
   0xd   :  { %p1180_p3 = scmp.ne.s32.totalorder %s36_s25, %s1179_s12  ;;  %p1185_p5 = scmp.lt.s32.totalorder %s1179_s12, %s1179_s12 }
   0xf   :  { %p1186_p6 = por %p1185_p5, %p1184_p4 }
  0x11   :  { %p1187_p7 = pnand %p1186_p6, %p1180_p3 }
  0x13   :  { %1190 = shalt.err (!%p1187_p7)
}
  0x14   :  { %38 = dma.hbm_to_vmem [thread:$0]  %s1599_s1, 32, %s36_s25, [#allocation7]  }
  0x15   :  { %s1191_s17 = scalar_lea.hbm %s1601_s3, 16384 }
  0x16   :  { %p1192_p8 = scmp.ne.s32.totalorder %s1601_s3, %s1191_s17  ;;  %p1195_p9 = scmp.lt.u32.totalorder %s1191_s17, %s1601_s3 }
  0x18   :  { %p1197_p10 = pnand %p1195_p9, %p1192_p8 }
  0x1a   :  { %1200 = shalt.err (!%p1197_p10)
}
  0x1b   :  { %s1201_s22 = scalar_lea.vmem %s1407_s27, 16384  ;;  %p1206_p12 = scmp.lt.s32.totalorder %s1407_s27, %s1407_s27 }
  0x1c   :  { %p1202_p11 = scmp.ne.s32.totalorder %s1407_s27, %s1201_s22  ;;  %p1207_p13 = scmp.lt.s32.totalorder %s1201_s22, %s1201_s22 }
  0x1e   :  { %p1208_p0 = por %p1207_p13, %p1206_p12 }
  0x20   :  { %p1209_p1 = pnand %p1208_p0, %p1202_p11 }
  0x22   :  { %1212 = shalt.err (!%p1209_p1)
}
  0x23   :  { %s1357_s1 = smov 512   ;;  %s1358_s23 = smov 32  }
  0x24   :  { %60 = dma.hbm_to_vmem [thread:$0]  %s1601_s3, 16384, %s1407_s27, [#allocation10], %s1357_s1, %s1357_s1, %s1358_s23  }
  0x25   :  { %s1359_s26 = smov [#allocation12]   ;;  %s1360_s29 = smov [#allocation3]  }
  0x26   :  { %s76_s28 = sshll.u32 %s1359_s26, 4  ;;  %s22_s30 = sshll.u32 %s1360_s29, 4  ;;  %s77_s28 = int_to_ptr.vmem [resolvable:$true] %s76_s28  ;;  %s1438_s30 = int_to_ptr.vmem [resolvable:$true] %s22_s30 }
  0x27   :  { %s1213_s10 = scalar_lea.hbm %s1603_s5, 16384 }
  0x28   :  { %p1214_p2 = scmp.ne.s32.totalorder %s1603_s5, %s1213_s10  ;;  %p1217_p3 = scmp.lt.u32.totalorder %s1213_s10, %s1603_s5 }
  0x2a   :  { %p1219_p4 = pnand %p1217_p3, %p1214_p2 }
  0x2c   :  { %1222 = shalt.err (!%p1219_p4)
}
  0x2d   :  { %s1223_s3 = scalar_lea.vmem %s77_s28, 16384  ;;  %p1228_p6 = scmp.lt.s32.totalorder %s77_s28, %s77_s28 }
  0x2e   :  { %p1224_p5 = scmp.ne.s32.totalorder %s77_s28, %s1223_s3  ;;  %p1229_p7 = scmp.lt.s32.totalorder %s1223_s3, %s1223_s3 }
  0x30   :  { %p1230_p8 = por %p1229_p7, %p1228_p6 }
  0x32   :  { %p1231_p9 = pnand %p1230_p8, %p1224_p5 }
  0x34   :  { %1234 = shalt.err (!%p1231_p9)
}
  0x35   :  { %s1361_s27 = smov 256   ;;  %s1362_s15 = smov 16  }
  0x36   :  { %82 = dma.hbm_to_vmem [thread:$0]  %s1603_s5, 16384, %s77_s28, [#allocation13], %s1361_s27, %s1361_s27, %s1362_s15  }
  0x37   :  { %s1235_s20 = scalar_lea.hbm %s1598_s0, 512 }
  0x38   :  { %p1236_p10 = scmp.ne.s32.totalorder %s1598_s0, %s1235_s20  ;;  %p1239_p11 = scmp.lt.u32.totalorder %s1235_s20, %s1598_s0 }
  0x3a   :  { %p1241_p12 = pnand %p1239_p11, %p1236_p10 }
  0x3c   :  { %1244 = shalt.err (!%p1241_p12)
}
  0x3d   :  { %s1245_s24 = scalar_lea.vmem %s1438_s30, 512  ;;  %p1250_p0 = scmp.lt.s32.totalorder %s1438_s30, %s1438_s30 }
  0x3e   :  { %p1246_p13 = scmp.ne.s32.totalorder %s1438_s30, %s1245_s24  ;;  %p1251_p1 = scmp.lt.s32.totalorder %s1245_s24, %s1245_s24 }
  0x40   :  { %p1252_p2 = por %p1251_p1, %p1250_p0 }
  0x42   :  { %p1253_p3 = pnand %p1252_p2, %p1246_p13 }
  0x44   :  { %1256 = shalt.err (!%p1253_p3)
}
  0x45   :  { %28 = dma.hbm_to_vmem [thread:$0]  %s1598_s0, 512, %s1438_s30, [#allocation4], %s1361_s27, %s1361_s27, %s1362_s15  }
  0x46   :  { %s1363_s26 = smov [#allocation8]   ;;  %s1364_s29 = smov [#allocation11]  }
  0x47   :  { %s45_s28 = sshll.u32 %s1363_s26, 4  ;;  %s67_s8 = sshll.u32 %s1364_s29, 4  ;;  %s46_s28 = int_to_ptr.vmem [resolvable:$true] %s45_s28  ;;  %s68_s8 = int_to_ptr.vmem [resolvable:$true] %s67_s8 }
  0x48   :  { %s1257_s11 = scalar_lea.hbm %s1600_s2, 32 }
  0x49   :  { %p1258_p4 = scmp.ne.s32.totalorder %s1600_s2, %s1257_s11  ;;  %p1261_p5 = scmp.lt.u32.totalorder %s1257_s11, %s1600_s2 }
  0x4b   :  { %p1263_p6 = pnand %p1261_p5, %p1258_p4 }
  0x4d   :  { %1266 = shalt.err (!%p1263_p6)
}
  0x4e   :  { %s1267_s0 = scalar_lea.vmem %s46_s28, 32  ;;  %p1272_p8 = scmp.lt.s32.totalorder %s46_s28, %s46_s28 }
  0x4f   :  { %p1268_p7 = scmp.ne.s32.totalorder %s46_s28, %s1267_s0  ;;  %p1273_p9 = scmp.lt.s32.totalorder %s1267_s0, %s1267_s0 }
  0x51   :  { %p1274_p10 = por %p1273_p9, %p1272_p8 }
  0x53   :  { %p1275_p11 = pnand %p1274_p10, %p1268_p7 }
  0x55   :  { %1278 = shalt.err (!%p1275_p11)
}
  0x56   :  { %48 = dma.hbm_to_vmem [thread:$0]  %s1600_s2, 32, %s46_s28, [#allocation7]  }
  0x57   :  { %s1279_s19 = scalar_lea.hbm %s1602_s4, 64 }
  0x58   :  { %p1280_p12 = scmp.ne.s32.totalorder %s1602_s4, %s1279_s19  ;;  %p1283_p13 = scmp.lt.u32.totalorder %s1279_s19, %s1602_s4 }
  0x5a   :  { %p1285_p0 = pnand %p1283_p13, %p1280_p12 }
  0x5c   :  { %1288 = shalt.err (!%p1285_p0)
}
  0x5d   :  { %s1289_s23 = scalar_lea.vmem %s68_s8, 64  ;;  %p1294_p2 = scmp.lt.s32.totalorder %s68_s8, %s68_s8 }
  0x5e   :  { %p1290_p1 = scmp.ne.s32.totalorder %s68_s8, %s1289_s23  ;;  %p1295_p3 = scmp.lt.s32.totalorder %s1289_s23, %s1289_s23 }
  0x60   :  { %p1296_p4 = por %p1295_p3, %p1294_p2 }
  0x62   :  { %p1297_p5 = pnand %p1296_p4, %p1290_p1 }
  0x64   :  { %1300 = shalt.err (!%p1297_p5)
}
  0x65   :  { %70 = dma.hbm_to_vmem [thread:$0]  %s1602_s4, 64, %s68_s8, [#allocation10]  }
  0x66   :  { %s1365_s5 = smov [#allocation14]   ;;  %s1301_s29 = scalar_lea.hbm %s1604_s6, 32 }
  0x67   :  { %s89_s25 = sshll.u32 %s1365_s5, 4  ;;  %p1302_p6 = scmp.ne.s32.totalorder %s1604_s6, %s1301_s29  ;;  %s90_s25 = int_to_ptr.vmem [resolvable:$true] %s89_s25 }
  0x68   :  { %p1305_p7 = scmp.lt.u32.totalorder %s1301_s29, %s1604_s6 }
  0x6a   :  { %p1307_p8 = pnand %p1305_p7, %p1302_p6 }
  0x6c   :  { %1310 = shalt.err (!%p1307_p8)
}
  0x6d   :  { %s1311_s13 = scalar_lea.vmem %s90_s25, 32  ;;  %p1316_p10 = scmp.lt.s32.totalorder %s90_s25, %s90_s25 }
  0x6e   :  { %p1312_p9 = scmp.ne.s32.totalorder %s90_s25, %s1311_s13  ;;  %p1317_p11 = scmp.lt.s32.totalorder %s1311_s13, %s1311_s13 }
  0x70   :  { %p1318_p12 = por %p1317_p11, %p1316_p10 }
  0x72   :  { %p1319_p13 = pnand %p1318_p12, %p1312_p9 }
  0x74   :  { %1322 = shalt.err (!%p1319_p13)
}
  0x75   :  { %92 = dma.hbm_to_vmem [thread:$0]  %s1604_s6, 32, %s90_s25, [#allocation13]  }
  0x76   :  { %1345 = dma.done.wait [#allocation4], 512  }
  0x77   :  { %1346 = vsyncadd [#allocation4], 4294966784 }
  0x78   :  { %1347 = dma.done.wait [#allocation7], 64  }
  0x79   :  { %1348 = vsyncadd [#allocation7], 4294967232 }
  0x7a   :  { %1349 = dma.done.wait [#allocation10], 16448  }
  0x7b   :  { %1350 = vsyncadd [#allocation10], 4294950848 }
  0x7c   :  { %1351 = dma.done.wait [#allocation13], 16416  }
  0x7d   :  { %1352 = vsyncadd [#allocation13], 4294950880  ;;  %v1511_v0 = vld [vmem:[#allocation3] sm:$0xff]  ;;  %v1513_v1 = vld [vmem:[#allocation3 + $0x8] sm:$0xff]  ;;  %s1366_s6 = smov [#allocation15]  }
  0x7e   :  { %v1515_v2 = vld [vmem:[#allocation3 + $0x10] sm:$0xff]  ;;  %v118_v3 = vadd.f32 %v1513_v1, %v1511_v0  ;;  %v1519_v4 = vld [vmem:[#allocation3 + $0x18] sm:$0xff]  ;;  %v187_v8 = vld [vmem:[#allocation9] sm:$0xff]  ;;  %s858_s14 = sshll.u32 %s1366_s6, 4  ;;  %s859_s14 = int_to_ptr.vmem [resolvable:$true] %s858_s14 }
  0x7f   :  { %v121_v5 = vadd.f32 %v1519_v4, %v1515_v2  ;;  %v188_v6 = vld [vmem:[#allocation9 + $0x8] sm:$0xff]  ;;  %v191_v10 = vld [vmem:[#allocation9 + $0x20] sm:$0xff]  ;;  %s1323_s3 = scalar_lea.vmem %s859_s14, 512  ;;  %p1328_p1 = scmp.lt.s32.totalorder %s859_s14, %s859_s14 }
  0x80   :  { %119 = vadd.xlane.f32.xlu0 %v118_v3  ;;  %v192_v7 = vld [vmem:[#allocation9 + $0x28] sm:$0xff]  ;;  %v875_v13 = vpack.c.bf16 %v191_v10, %v187_v8  ;;  %v195_v15 = vld [vmem:[#allocation9 + $0x40] sm:$0xff]  ;;  %p1324_p0 = scmp.ne.s32.totalorder %s859_s14, %s1323_s3  ;;  %p1329_p2 = scmp.lt.s32.totalorder %s1323_s3, %s1323_s3 }
  0x81   :  { %v873_v9 = vpack.c.bf16 %v192_v7, %v188_v6  ;;  %v196_v11 = vld [vmem:[#allocation9 + $0x48] sm:$0xff]  ;;  %v199_v16 = vld [vmem:[#allocation9 + $0x60] sm:$0xff] }
  0x82   :  { %v200_v12 = vld [vmem:[#allocation9 + $0x68] sm:$0xff]  ;;  %v879_v19 = vpack.c.bf16 %v199_v16, %v195_v15  ;;  %v203_v21 = vld [vmem:[#allocation9 + $0x80] sm:$0xff]  ;;  %p1330_p3 = por %p1329_p2, %p1328_p1 }
  0x83   :  { %v877_v14 = vpack.c.bf16 %v200_v12, %v196_v11  ;;  %v204_v17 = vld [vmem:[#allocation9 + $0x88] sm:$0xff]  ;;  %874 = vmatprep.subr.bf16.mxu1 %v873_v9  ;;  %v207_v22 = vld [vmem:[#allocation9 + $0xa0] sm:$0xff] }
  0x84   :  { %122 = vadd.xlane.f32.xlu0 %v121_v5  ;;  %v208_v18 = vld [vmem:[#allocation9 + $0xa8] sm:$0xff]  ;;  %876 = vmatpush1.bf16.msra.mxu1 %v875_v13  ;;  %v883_v25 = vpack.c.bf16 %v207_v22, %v203_v21  ;;  %v211_v27 = vld [vmem:[#allocation9 + $0xc0] sm:$0xff]  ;;  %p1331_p4 = pnand %p1330_p3, %p1324_p0 }
  0x85   :  { %878 = vmatprep.subr.bf16.mxu1 %v877_v14  ;;  %v881_v20 = vpack.c.bf16 %v208_v18, %v204_v17  ;;  %v212_v23 = vld [vmem:[#allocation9 + $0xc8] sm:$0xff]  ;;  %v215_v28 = vld [vmem:[#allocation9 + $0xe0] sm:$0xff] }
  0x86   :  { %v216_v24 = vld [vmem:[#allocation9 + $0xe8] sm:$0xff]  ;;  %v887_v31 = vpack.c.bf16 %v215_v28, %v211_v27  ;;  %v219_v33 = vld [vmem:[#allocation9 + $0x100] sm:$0xff] }
  0x87   :  { %v885_v26 = vpack.c.bf16 %v216_v24, %v212_v23  ;;  %v220_v29 = vld [vmem:[#allocation9 + $0x108] sm:$0xff]  ;;  %v223_v34 = vld [vmem:[#allocation9 + $0x120] sm:$0xff] }
  0x88   :  { %880 = vmatpush1.bf16.msra.mxu1 %v879_v19  ;;  %v224_v30 = vld [vmem:[#allocation9 + $0x128] sm:$0xff]  ;;  %v891_v37 = vpack.c.bf16 %v223_v34, %v219_v33  ;;  %v227_v39 = vld [vmem:[#allocation9 + $0x140] sm:$0xff] }
  0x89   :  { %882 = vmatprep.subr.bf16.mxu1 %v881_v20  ;;  %v889_v32 = vpack.c.bf16 %v224_v30, %v220_v29  ;;  %v228_v35 = vld [vmem:[#allocation9 + $0x148] sm:$0xff]  ;;  %v231_v40 = vld [vmem:[#allocation9 + $0x160] sm:$0xff] }
  0x8a   :  { %v232_v36 = vld [vmem:[#allocation9 + $0x168] sm:$0xff]  ;;  %v895_v43 = vpack.c.bf16 %v231_v40, %v227_v39  ;;  %v235_v45 = vld [vmem:[#allocation9 + $0x180] sm:$0xff] }
  0x8b   :  { %v893_v38 = vpack.c.bf16 %v232_v36, %v228_v35  ;;  %v236_v41 = vld [vmem:[#allocation9 + $0x188] sm:$0xff]  ;;  %v239_v46 = vld [vmem:[#allocation9 + $0x1a0] sm:$0xff] }
  0x8c   :  { %884 = vmatpush1.bf16.msra.mxu1 %v883_v25  ;;  %v240_v42 = vld [vmem:[#allocation9 + $0x1a8] sm:$0xff]  ;;  %v899_v49 = vpack.c.bf16 %v239_v46, %v235_v45  ;;  %v243_v51 = vld [vmem:[#allocation9 + $0x1c0] sm:$0xff] }
  0x8d   :  { %886 = vmatprep.subr.bf16.mxu1 %v885_v26  ;;  %v897_v44 = vpack.c.bf16 %v240_v42, %v236_v41  ;;  %v244_v47 = vld [vmem:[#allocation9 + $0x1c8] sm:$0xff]  ;;  %v247_v52 = vld [vmem:[#allocation9 + $0x1e0] sm:$0xff] }
  0x8e   :  { %v248_v48 = vld [vmem:[#allocation9 + $0x1e8] sm:$0xff]  ;;  %v903_v55 = vpack.c.bf16 %v247_v52, %v243_v51  ;;  %v251_v57 = vld [vmem:[#allocation9 + $0x200] sm:$0xff]  ;;  %v190_v52 = vld [vmem:[#allocation9 + $0x18] sm:$0xff] }
  0x8f   :  { %v901_v50 = vpack.c.bf16 %v248_v48, %v244_v47  ;;  %v252_v53 = vld [vmem:[#allocation9 + $0x208] sm:$0xff]  ;;  %v255_v58 = vld [vmem:[#allocation9 + $0x220] sm:$0xff] }
  0x90   :  { %888 = vmatpush1.bf16.msra.mxu1 %v887_v31  ;;  %v256_v54 = vld [vmem:[#allocation9 + $0x228] sm:$0xff]  ;;  %v907_v61 = vpack.c.bf16 %v255_v58, %v251_v57  ;;  %v259_v63 = vld [vmem:[#allocation9 + $0x240] sm:$0xff] }
  0x91   :  { %890 = vmatprep.subr.bf16.mxu1 %v889_v32  ;;  %v905_v56 = vpack.c.bf16 %v256_v54, %v252_v53  ;;  %v260_v59 = vld [vmem:[#allocation9 + $0x248] sm:$0xff]  ;;  %v263_v3 = vld [vmem:[#allocation9 + $0x260] sm:$0xff]  ;;  %v194_v53 = vld [vmem:[#allocation9 + $0x38] sm:$0xff] }
  0x92   :  { %v264_v60 = vld [vmem:[#allocation9 + $0x268] sm:$0xff]  ;;  %v911_v7 = vpack.c.bf16 %v263_v3, %v259_v63  ;;  %v267_v9 = vld [vmem:[#allocation9 + $0x280] sm:$0xff]  ;;  %v937_v54 = vpack.c.bf16 %v194_v53, %v190_v52  ;;  %v573_v53 = vld [vmem:[#allocation12 + $0x130] sm:$0xff] }
  0x93   :  { %v909_v62 = vpack.c.bf16 %v264_v60, %v260_v59  ;;  %v268_v5 = vld [vmem:[#allocation9 + $0x288] sm:$0xff]  ;;  %v271_v10 = vld [vmem:[#allocation9 + $0x2a0] sm:$0xff]  ;;  %v537_v59 = vld [vmem:[#allocation12 + $0x10] sm:$0xff] }
  0x94   :  { %892 = vmatpush1.bf16.msra.mxu1 %v891_v37  ;;  %v272_v6 = vld [vmem:[#allocation9 + $0x2a8] sm:$0xff]  ;;  %v915_v11 = vpack.c.bf16 %v271_v10, %v267_v9  ;;  %v275_v27 = vld [vmem:[#allocation9 + $0x2c0] sm:$0xff] }
  0x95   :  { %894 = vmatprep.subr.bf16.mxu1 %v893_v38  ;;  %v913_v8 = vpack.c.bf16 %v272_v6, %v268_v5  ;;  %v276_v24 = vld [vmem:[#allocation9 + $0x2c8] sm:$0xff]  ;;  %v279_v28 = vld [vmem:[#allocation9 + $0x2e0] sm:$0xff]  ;;  %v541_v5 = vld [vmem:[#allocation12 + $0x30] sm:$0xff] }
  0x96   :  { %v280_v25 = vld [vmem:[#allocation9 + $0x2e8] sm:$0xff]  ;;  %v283_v31 = vld [vmem:[#allocation9 + $0x300] sm:$0xff] }
  0x97   :  { %v917_v26 = vpack.c.bf16 %v280_v25, %v276_v24  ;;  %v288_v29 = vld [vmem:[#allocation9 + $0x328] sm:$0xff]  ;;  %v287_v32 = vld [vmem:[#allocation9 + $0x320] sm:$0xff]  ;;  %v553_v25 = vld [vmem:[#allocation12 + $0x90] sm:$0xff] }
  0x98   :  { %896 = vmatpush1.bf16.msra.mxu1 %v895_v43  ;;  %v923_v33 = vpack.c.bf16 %v287_v32, %v283_v31  ;;  %v292_v34 = vld [vmem:[#allocation9 + $0x348] sm:$0xff]  ;;  %v291_v37 = vld [vmem:[#allocation9 + $0x340] sm:$0xff] }
  0x99   :  { %898 = vmatprep.subr.bf16.mxu1 %v897_v44  ;;  %v296_v35 = vld [vmem:[#allocation9 + $0x368] sm:$0xff]  ;;  %v295_v38 = vld [vmem:[#allocation9 + $0x360] sm:$0xff] }
  0x9a   :  { %v925_v36 = vpack.c.bf16 %v296_v35, %v292_v34  ;;  %v927_v39 = vpack.c.bf16 %v295_v38, %v291_v37  ;;  %v300_v40 = vld [vmem:[#allocation9 + $0x388] sm:$0xff]  ;;  %v299_v42 = vld [vmem:[#allocation9 + $0x380] sm:$0xff]  ;;  %v561_v35 = vld [vmem:[#allocation12 + $0xd0] sm:$0xff] }
  0x9b   :  { %v304_v41 = vld [vmem:[#allocation9 + $0x3a8] sm:$0xff]  ;;  %v303_v44 = vld [vmem:[#allocation9 + $0x3a0] sm:$0xff] }
  0x9c   :  { %900 = vmatpush1.bf16.msra.mxu1 %v899_v49  ;;  %v929_v43 = vpack.c.bf16 %v304_v41, %v300_v40  ;;  %v308_v45 = vld [vmem:[#allocation9 + $0x3c8] sm:$0xff]  ;;  %v931_v47 = vpack.c.bf16 %v303_v44, %v299_v42  ;;  %v307_v49 = vld [vmem:[#allocation9 + $0x3c0] sm:$0xff]  ;;  %v565_v41 = vld [vmem:[#allocation12 + $0xf0] sm:$0xff] }
  0x9d   :  { %902 = vmatprep.subr.bf16.mxu1 %v901_v50  ;;  %v312_v46 = vld [vmem:[#allocation9 + $0x3e8] sm:$0xff]  ;;  %v311_v50 = vld [vmem:[#allocation9 + $0x3e0] sm:$0xff] }
  0x9e   :  { %v933_v48 = vpack.c.bf16 %v312_v46, %v308_v45  ;;  %v935_v51 = vpack.c.bf16 %v311_v50, %v307_v49  ;;  %v535_v57 = vld [vmem:[#allocation12] sm:$0xff]  ;;  %v540_v60 = vld [vmem:[#allocation12 + $0x28] sm:$0xff]  ;;  %v562_v31 = vld [vmem:[#allocation12 + $0xd8] sm:$0xff] }
  0x9f   :  { %v539_v3 = vld [vmem:[#allocation12 + $0x20] sm:$0xff]  ;;  %v544_v6 = vld [vmem:[#allocation12 + $0x48] sm:$0xff]  ;;  %v566_v37 = vld [vmem:[#allocation12 + $0xf8] sm:$0xff] }
  0xa0   :  { %904 = vmatpush1.bf16.msra.mxu1 %v903_v55  ;;  %v536_v55 = vld [vmem:[#allocation12 + $0x8] sm:$0xff]  ;;  %v543_v10 = vld [vmem:[#allocation12 + $0x40] sm:$0xff]  ;;  %v574_v49 = vld [vmem:[#allocation12 + $0x138] sm:$0xff] }
  0xa1   :  { %906 = vmatprep.subr.bf16.mxu1 %v905_v56  ;;  %v538_v56 = vld [vmem:[#allocation12 + $0x18] sm:$0xff]  ;;  %v551_v24 = vld [vmem:[#allocation12 + $0x80] sm:$0xff]  ;;  %v568_v42 = vld [vmem:[#allocation12 + $0x108] sm:$0xff] }
  0xa2   :  { %v1001_v58 = vpack.c.bf16 %v538_v56, %v536_v55  ;;  %v559_v34 = vld [vmem:[#allocation12 + $0xc0] sm:$0xff]  ;;  %v578_v55 = vld [vmem:[#allocation12 + $0x158] sm:$0xff] }
  0xa3   :  { %v1027_v38 = vpack.c.bf16 %v561_v35, %v559_v34  ;;  %v563_v40 = vld [vmem:[#allocation12 + $0xe0] sm:$0xff]  ;;  %v206_v35 = vld [vmem:[#allocation9 + $0x98] sm:$0xff] }
  0xa4   :  { %908 = vmatpush1.bf16.msra.mxu1 %v907_v61  ;;  %v542_v61 = vld [vmem:[#allocation12 + $0x38] sm:$0xff]  ;;  %1002 = vmatprep.subr.bf16.mxu0 %v1001_v58  ;;  %v1031_v44 = vpack.c.bf16 %v565_v41, %v563_v40  ;;  %v567_v46 = vld [vmem:[#allocation12 + $0x100] sm:$0xff]  ;;  %v205_v40 = vld [vmem:[#allocation9 + $0x90] sm:$0xff] }
  0xa5   :  { %910 = vmatprep.subr.bf16.mxu1 %v909_v62  ;;  %v1003_v62 = vpack.c.bf16 %v537_v59, %v535_v57  ;;  %v1005_v63 = vpack.c.bf16 %v542_v61, %v540_v60  ;;  %v571_v52 = vld [vmem:[#allocation12 + $0x120] sm:$0xff]  ;;  %v577_v60 = vld [vmem:[#allocation12 + $0x150] sm:$0xff] }
  0xa6   :  { %v1039_v56 = vpack.c.bf16 %v573_v53, %v571_v52  ;;  %v575_v59 = vld [vmem:[#allocation12 + $0x140] sm:$0xff]  ;;  %v214_v41 = vld [vmem:[#allocation9 + $0xd8] sm:$0xff]  ;;  %v225_v52 = vld [vmem:[#allocation9 + $0x130] sm:$0xff] }
  0xa7   :  { %1004 = vmatpush1.bf16.msra.mxu0 %v1003_v62  ;;  %v153_v62 = vlaneseq  ;;  %v230_v53 = vld [vmem:[#allocation9 + $0x158] sm:$0xff] }
  0xa8   :  { %912 = vmatpush1.bf16.msra.mxu1 %v911_v7  ;;  %v546_v7 = vld [vmem:[#allocation12 + $0x58] sm:$0xff]  ;;  %1006 = vmatprep.subr.bf16.mxu0 %v1005_v63 }
  0xa9   :  { %914 = vmatprep.subr.bf16.mxu1 %v913_v8  ;;  %v1007_v8 = vpack.c.bf16 %v541_v5, %v539_v3  ;;  %v1009_v9 = vpack.c.bf16 %v546_v7, %v544_v6  ;;  %v1043_v3 = vpack.c.bf16 %v577_v60, %v575_v59  ;;  %v1543_v7 = vshrl.u32 %v153_v62, 7  ;;  %v238_v59 = vld [vmem:[#allocation9 + $0x198] sm:$0xff] }
  0xaa   :  { %v242_v60 = vld [vmem:[#allocation9 + $0x1b8] sm:$0xff] }
  0xab   :  { %1008 = vmatpush1.bf16.msra.mxu0 %v1007_v8  ;;  %v961_v62 = vpack.c.bf16 %v242_v60, %v238_v59  ;;  %v309_v59 = vld [vmem:[#allocation9 + $0x3d0] sm:$0xff] }
  0xac   :  { %916 = vmatpush1.bf16.msra.mxu1 %v915_v11  ;;  %v545_v11 = vld [vmem:[#allocation12 + $0x50] sm:$0xff]  ;;  %1010 = vmatprep.subr.bf16.mxu0 %v1009_v9  ;;  %v1546_v9 = vsub.s32 0, %v1543_v7 }
  0xad   :  { %918 = vmatprep.subr.bf16.mxu1 %v917_v26  ;;  %v556_v26 = vld [vmem:[#allocation12 + $0xa8] sm:$0xff] }
  0xae   :  { %v313_v60 = vld [vmem:[#allocation9 + $0x3f0] sm:$0xff] }
 0x10d   :  { %v120_v12 = vpop.xlane.xlu0 %119 }
 0x10e   :  { %v125_v13 = vmul.f32 0.00390625, %v120_v12  ;;  %v548_v12 = vld [vmem:[#allocation12 + $0x68] sm:$0xff] }
 0x110   :  { %v1524_v14 = vsub.f32 %v1511_v0, %v125_v13  ;;  %v1527_v15 = vsub.f32 %v1513_v1, %v125_v13  ;;  %v550_v13 = vld [vmem:[#allocation12 + $0x78] sm:$0xff] }
 0x111   :  { %v123_v16 = vpop.xlane.xlu0 %122 }
 0x112   :  { %v126_v17 = vmul.f32 0.00390625, %v123_v16  ;;  %v131_v18 = vmul.f32 %v1524_v14, %v1524_v14  ;;  %v132_v19 = vmul.f32 %v1527_v15, %v1527_v15  ;;  %v1011_v16 = vpack.c.bf16 %v545_v11, %v543_v10  ;;  %v151_v11 = vld [vmem:[#allocation6] sm:$0x3] }
 0x113   :  { %v1549_v10 = vsub.s32 1, %v1543_v7 }
 0x114   :  { %v1534_v20 = vsub.f32 %v1515_v2, %v126_v17  ;;  %v1537_v21 = vsub.f32 %v1519_v4, %v126_v17  ;;  %v135_v22 = vadd.f32 %v132_v19, %v131_v18  ;;  %v919_v2 = vpack.c.bf16 %v279_v28, %v275_v27  ;;  %v284_v4 = vld [vmem:[#allocation9 + $0x308] sm:$0xff]  ;;  %v549_v19 = vld [vmem:[#allocation12 + $0x70] sm:$0xff]  ;;  %1012 = vmatpush1.bf16.msra.mxu0 %v1011_v16  ;;  %v558_v27 = vld [vmem:[#allocation12 + $0xb8] sm:$0xff] }
 0x115   :  { %v921_v30 = vpack.c.bf16 %v288_v29, %v284_v4  ;;  %v1013_v17 = vpack.c.bf16 %v550_v13, %v548_v12  ;;  %v547_v18 = vld [vmem:[#allocation12 + $0x60] sm:$0xff]  ;;  %v1019_v28 = vpack.c.bf16 %v553_v25, %v551_v24  ;;  %v557_v29 = vld [vmem:[#allocation12 + $0xb0] sm:$0xff]  ;;  %v167_v12 = vld [vmem:[#allocation8] sm:$0x3]  ;;  %v156_v13 = vrot.slane %v151_v11, %v1546_v9 }
 0x116   :  { %136 = vadd.xlane.f32.xlu1 %v135_v22  ;;  %v133_v0 = vmul.f32 %v1534_v20, %v1534_v20  ;;  %v134_v1 = vmul.f32 %v1537_v21, %v1537_v21  ;;  %920 = vmatpush1.bf16.msra.mxu1 %v919_v2  ;;  %v552_v22 = vld [vmem:[#allocation12 + $0x88] sm:$0xff]  ;;  %v1021_v2 = vpack.c.bf16 %v558_v27, %v556_v26  ;;  %v555_v4 = vld [vmem:[#allocation12 + $0xa0] sm:$0xff]  ;;  %v198_v26 = vld [vmem:[#allocation9 + $0x58] sm:$0xff] }
 0x117   :  { %922 = vmatprep.subr.bf16.mxu1 %v921_v30  ;;  %1014 = vmatprep.subr.bf16.mxu0 %v1013_v17  ;;  %v560_v30 = vld [vmem:[#allocation12 + $0xc8] sm:$0xff]  ;;  %v1023_v32 = vpack.c.bf16 %v557_v29, %v555_v4  ;;  %v160_v16 = vrot.slane %v151_v11, %v1549_v10  ;;  %v202_v27 = vld [vmem:[#allocation9 + $0x78] sm:$0xff] }
 0x118   :  { %v138_v23 = vadd.f32 %v134_v1, %v133_v0  ;;  %v554_v0 = vld [vmem:[#allocation12 + $0x98] sm:$0xff]  ;;  %v1015_v1 = vpack.c.bf16 %v549_v19, %v547_v18  ;;  %v172_v19 = vrot.slane %v167_v12, %v1546_v9 }
 0x11a   :  { %139 = vadd.xlane.f32.xlu1 %v138_v23  ;;  %924 = vmatpush1.bf16.msra.mxu1 %v923_v33  ;;  %v1017_v23 = vpack.c.bf16 %v554_v0, %v552_v22  ;;  %v1025_v33 = vpack.c.bf16 %v562_v31, %v560_v30  ;;  %v176_v22 = vrot.slane %v167_v12, %v1549_v10  ;;  %v245_v12 = vld [vmem:[#allocation9 + $0x1d0] sm:$0xff] }
 0x11b   :  { %926 = vmatprep.subr.bf16.mxu1 %v925_v36  ;;  %1016 = vmatpush1.bf16.msra.mxu0 %v1015_v1  ;;  %v564_v36 = vld [vmem:[#allocation12 + $0xe8] sm:$0xff]  ;;  %v941_v31 = vpack.c.bf16 %v202_v27, %v198_v26 }
 0x11c   :  { %1018 = vmatprep.subr.bf16.mxu0 %v1017_v23  ;;  %v189_v1 = vld [vmem:[#allocation9 + $0x10] sm:$0xff] }
 0x11d   :  { %v193_v23 = vld [vmem:[#allocation9 + $0x30] sm:$0xff] }
 0x11e   :  { %928 = vmatpush1.bf16.msra.mxu1 %v927_v39  ;;  %v1029_v39 = vpack.c.bf16 %v566_v37, %v564_v36  ;;  %v210_v36 = vld [vmem:[#allocation9 + $0xb8] sm:$0xff]  ;;  %v261_v26 = vld [vmem:[#allocation9 + $0x250] sm:$0xff] }
 0x11f   :  { %930 = vmatprep.subr.bf16.mxu1 %v929_v43  ;;  %1020 = vmatpush1.bf16.msra.mxu0 %v1019_v28  ;;  %v570_v43 = vld [vmem:[#allocation12 + $0x118] sm:$0xff]  ;;  %v265_v27 = vld [vmem:[#allocation9 + $0x270] sm:$0xff] }
 0x120   :  { %1022 = vmatprep.subr.bf16.mxu0 %v1021_v2  ;;  %v1033_v45 = vpack.c.bf16 %v570_v43, %v568_v42  ;;  %v939_v2 = vpack.c.bf16 %v193_v23, %v189_v1  ;;  %v218_v42 = vld [vmem:[#allocation9 + $0xf8] sm:$0xff] }
 0x121   :  { %v262_v1 = vld [vmem:[#allocation9 + $0x258] sm:$0xff] }
 0x122   :  { %932 = vmatpush1.bf16.msra.mxu1 %v931_v47  ;;  %v569_v47 = vld [vmem:[#allocation12 + $0x110] sm:$0xff] }
 0x123   :  { %934 = vmatprep.subr.bf16.mxu1 %v933_v48  ;;  %1024 = vmatpush1.bf16.msra.mxu0 %v1023_v32  ;;  %v572_v48 = vld [vmem:[#allocation12 + $0x128] sm:$0xff]  ;;  %v1035_v50 = vpack.c.bf16 %v569_v47, %v567_v46  ;;  %v222_v47 = vld [vmem:[#allocation9 + $0x118] sm:$0xff] }
 0x124   :  { %1026 = vmatprep.subr.bf16.mxu0 %v1025_v33  ;;  %v197_v32 = vld [vmem:[#allocation9 + $0x50] sm:$0xff]  ;;  %v266_v23 = vld [vmem:[#allocation9 + $0x278] sm:$0xff] }
 0x125   :  { %v201_v33 = vld [vmem:[#allocation9 + $0x70] sm:$0xff] }
 0x126   :  { %936 = vmatpush1.bf16.msra.mxu1 %v935_v51  ;;  %v1037_v51 = vpack.c.bf16 %v574_v49, %v572_v48  ;;  %v217_v46 = vld [vmem:[#allocation9 + $0xf0] sm:$0xff]  ;;  %v226_v48 = vld [vmem:[#allocation9 + $0x138] sm:$0xff] }
 0x127   :  { %938 = vmatprep.subr.bf16.mxu1 %v937_v54  ;;  %1028 = vmatpush1.bf16.msra.mxu0 %v1027_v38  ;;  %v576_v54 = vld [vmem:[#allocation12 + $0x148] sm:$0xff] }
 0x128   :  { %1030 = vmatprep.subr.bf16.mxu0 %v1029_v39  ;;  %v1041_v58 = vpack.c.bf16 %v578_v55, %v576_v54  ;;  %v943_v39 = vpack.c.bf16 %v201_v33, %v197_v32  ;;  %v234_v54 = vld [vmem:[#allocation9 + $0x178] sm:$0xff] }
 0x129   :  { %v278_v32 = vld [vmem:[#allocation9 + $0x2d8] sm:$0xff] }
 0x12a   :  { %v282_v33 = vld [vmem:[#allocation9 + $0x2f8] sm:$0xff] }
 0x12b   :  { %1032 = vmatpush1.bf16.msra.mxu0 %v1031_v44  ;;  %v949_v44 = vpack.c.bf16 %v218_v42, %v214_v41  ;;  %v285_v41 = vld [vmem:[#allocation9 + $0x310] sm:$0xff] }
 0x12c   :  { %1034 = vmatprep.subr.bf16.mxu0 %v1033_v45  ;;  %v213_v45 = vld [vmem:[#allocation9 + $0xd0] sm:$0xff] }
 0x12d   :  { %v951_v49 = vpack.c.bf16 %v217_v46, %v213_v45  ;;  %v289_v42 = vld [vmem:[#allocation9 + $0x330] sm:$0xff] }
 0x12e   :  { %v987_v45 = vpack.c.bf16 %v289_v42, %v285_v41 }
 0x12f   :  { %1036 = vmatpush1.bf16.msra.mxu0 %v1035_v50  ;;  %v953_v50 = vpack.c.bf16 %v226_v48, %v222_v47  ;;  %v293_v47 = vld [vmem:[#allocation9 + $0x350] sm:$0xff] }
 0x130   :  { %1038 = vmatprep.subr.bf16.mxu0 %v1037_v51  ;;  %v221_v51 = vld [vmem:[#allocation9 + $0x110] sm:$0xff] }
 0x131   :  { %v955_v55 = vpack.c.bf16 %v225_v52, %v221_v51  ;;  %v297_v48 = vld [vmem:[#allocation9 + $0x370] sm:$0xff] }
 0x132   :  { %v991_v51 = vpack.c.bf16 %v297_v48, %v293_v47 }
 0x133   :  { %1040 = vmatpush1.bf16.msra.mxu0 %v1039_v56  ;;  %v957_v56 = vpack.c.bf16 %v234_v54, %v230_v53  ;;  %v301_v53 = vld [vmem:[#allocation9 + $0x390] sm:$0xff] }
 0x134   :  { %1042 = vmatprep.subr.bf16.mxu0 %v1041_v58  ;;  %v233_v58 = vld [vmem:[#allocation9 + $0x170] sm:$0xff] }
 0x135   :  { %v305_v54 = vld [vmem:[#allocation9 + $0x3b0] sm:$0xff] }
 0x137   :  { %1044 = vmatpush1.bf16.msra.mxu0 %v1043_v3  ;;  %v241_v3 = vld [vmem:[#allocation9 + $0x1b0] sm:$0xff] }
 0x1a3   :  { %v137_v57 = vpop.xlane.xlu1 %136 }
 0x1a4   :  { %v141_v61 = vmul.f32 0.00390625, %v137_v57  ;;  %v229_v57 = vld [vmem:[#allocation9 + $0x150] sm:$0xff] }
 0x1a6   :  { %v143_v63 = vadd.f32 1e-05, %v141_v61  ;;  %v959_v61 = vpack.c.bf16 %v233_v58, %v229_v57  ;;  %v995_v57 = vpack.c.bf16 %v305_v54, %v301_v53  ;;  %v601_v53 = vld [vmem:[#allocation12 + $0x210] sm:$0xff] }
 0x1a7   :  { %v140_v5 = vpop.xlane.xlu1 %139 }
 0x1a8   :  { %1145 = vrsqrt.f32 %v143_v63  ;;  %v142_v6 = vmul.f32 0.00390625, %v140_v5  ;;  %v237_v63 = vld [vmem:[#allocation9 + $0x190] sm:$0xff]  ;;  %v246_v5 = vld [vmem:[#allocation9 + $0x1d8] sm:$0xff] }
 0x1aa   :  { %v144_v8 = vadd.f32 1e-05, %v142_v6  ;;  %v250_v6 = vld [vmem:[#allocation9 + $0x1f8] sm:$0xff] }
 0x1ab   :  { %v965_v11 = vpack.c.bf16 %v250_v6, %v246_v5  ;;  %v579_v5 = vld [vmem:[#allocation12 + $0x160] sm:$0xff]  ;;  %v581_v6 = vld [vmem:[#allocation12 + $0x170] sm:$0xff] }
 0x1ac   :  { %1147 = vrsqrt.f32 %v144_v8  ;;  %v963_v8 = vpack.c.bf16 %v241_v3, %v237_v63  ;;  %v582_v63 = vld [vmem:[#allocation12 + $0x178] sm:$0xff] }
 0x1b2   :  { %v1146_v17 = vpop.eup %1145 }
 0x1b3   :  { %v148_v18 = vmul.f32 %v1146_v17, %v1527_v15  ;;  %v147_v0 = vmul.f32 %v1146_v17, %v1524_v14  ;;  %v258_v17 = vld [vmem:[#allocation9 + $0x238] sm:$0xff] }
 0x1b5   :  { %v164_v24 = vmul.f32 %v160_v16, %v148_v18  ;;  %v163_v25 = vmul.f32 %v156_v13, %v147_v0  ;;  %v257_v0 = vld [vmem:[#allocation9 + $0x230] sm:$0xff] }
 0x1b6   :  { %v1148_v28 = vpop.eup %1147 }
 0x1b7   :  { %v180_v4 = vadd.f32 %v176_v22, %v164_v24  ;;  %v1557_v29 = vadd.f32 %v172_v19, %v163_v25  ;;  %v150_v30 = vmul.f32 %v1148_v28, %v1537_v21  ;;  %v149_v15 = vmul.f32 %v1148_v28, %v1534_v20  ;;  %v209_v20 = vld [vmem:[#allocation9 + $0xb0] sm:$0xff]  ;;  %v270_v28 = vld [vmem:[#allocation9 + $0x298] sm:$0xff] }
 0x1b8   :  { %v945_v21 = vpack.c.bf16 %v210_v36, %v206_v35  ;;  %v947_v43 = vpack.c.bf16 %v209_v20, %v205_v40  ;;  %v973_v25 = vpack.c.bf16 %v266_v23, %v262_v1  ;;  %v277_v35 = vld [vmem:[#allocation9 + $0x2d0] sm:$0xff]  ;;  %v594_v23 = vld [vmem:[#allocation12 + $0x1d8] sm:$0xff] }
 0x1b9   :  { %401 = vmatprep.mubr.f32.mxu1 %v180_v4  ;;  %v166_v14 = vmul.f32 %v160_v16, %v150_v30  ;;  %v165_v34 = vmul.f32 %v156_v13, %v149_v15  ;;  %v249_v13 = vld [vmem:[#allocation9 + $0x1f0] sm:$0xff]  ;;  %v254_v16 = vld [vmem:[#allocation9 + $0x218] sm:$0xff] }
 0x1ba   :  { %402 = vmatmul.mubr.f32.vlgmr.msra.gmra.mrb[0].mxu1 %v1557_v29  ;;  %v967_v18 = vpack.c.bf16 %v249_v13, %v245_v12  ;;  %v269_v15 = vld [vmem:[#allocation9 + $0x290] sm:$0xff]  ;;  %v586_v12 = vld [vmem:[#allocation12 + $0x198] sm:$0xff] }
 0x1bb   :  { %940 = vmatpush1.bf16.msra.mxu1 %v939_v2  ;;  %v1562_v37 = vadd.f32 %v176_v22, %v166_v14  ;;  %v1564_v38 = vadd.f32 %v172_v19, %v165_v34  ;;  %v969_v19 = vpack.c.bf16 %v258_v17, %v254_v16  ;;  %v253_v22 = vld [vmem:[#allocation9 + $0x210] sm:$0xff]  ;;  %v274_v2 = vld [vmem:[#allocation9 + $0x2b8] sm:$0xff]  ;;  %v981_v34 = vpack.c.bf16 %v282_v33, %v278_v32  ;;  %v583_v16 = vld [vmem:[#allocation12 + $0x180] sm:$0xff] }
 0x1bc   :  { %942 = vmatprep.subr.bf16.mxu1 %v941_v31  ;;  %v971_v24 = vpack.c.bf16 %v257_v0, %v253_v22  ;;  %v977_v30 = vpack.c.bf16 %v274_v2, %v270_v28  ;;  %v273_v31 = vld [vmem:[#allocation9 + $0x2b0] sm:$0xff]  ;;  %v598_v2 = vld [vmem:[#allocation12 + $0x1f8] sm:$0xff] }
 0x1bd   :  { %407 = vmatprep.mubr.f32.mxu1 %v1562_v37  ;;  %v979_v14 = vpack.c.bf16 %v273_v31, %v269_v15  ;;  %v281_v36 = vld [vmem:[#allocation9 + $0x2f0] sm:$0xff]  ;;  %v602_v33 = vld [vmem:[#allocation12 + $0x218] sm:$0xff] }
 0x1be   :  { %408 = vmatmul.mubr.f32.gmra.mrb[2].mxu1 %v1564_v38  ;;  %v983_v40 = vpack.c.bf16 %v281_v36, %v277_v35  ;;  %v585_v17 = vld [vmem:[#allocation12 + $0x190] sm:$0xff]  ;;  %v592_v1 = vld [vmem:[#allocation12 + $0x1c8] sm:$0xff] }
 0x1bf   :  { %944 = vmatpush1.bf16.msra.mxu1 %v943_v39  ;;  %478 = vmatprep.mubr.f32.mxu1 %v180_v4  ;;  %v975_v4 = vpack.c.bf16 %v265_v27, %v261_v26  ;;  %v286_v39 = vld [vmem:[#allocation9 + $0x318] sm:$0xff]  ;;  %v596_v28 = vld [vmem:[#allocation12 + $0x1e8] sm:$0xff] }
 0x1c0   :  { %946 = vmatprep.subr.bf16.mxu1 %v945_v21  ;;  %v290_v21 = vld [vmem:[#allocation9 + $0x338] sm:$0xff]  ;;  %v600_v32 = vld [vmem:[#allocation12 + $0x208] sm:$0xff] }
 0x1c1   :  { %v985_v20 = vpack.c.bf16 %v290_v21, %v286_v39  ;;  %v589_v22 = vld [vmem:[#allocation12 + $0x1b0] sm:$0xff] }
 0x1c2   :  { %v593_v26 = vld [vmem:[#allocation12 + $0x1d0] sm:$0xff] }
 0x1c3   :  { %948 = vmatpush1.bf16.msra.mxu1 %v947_v43  ;;  %v294_v43 = vld [vmem:[#allocation9 + $0x358] sm:$0xff] }
 0x1c4   :  { %950 = vmatprep.subr.bf16.mxu1 %v949_v44  ;;  %v298_v44 = vld [vmem:[#allocation9 + $0x378] sm:$0xff] }
 0x1c5   :  { %v989_v46 = vpack.c.bf16 %v298_v44, %v294_v43  ;;  %v597_v15 = vld [vmem:[#allocation12 + $0x1f0] sm:$0xff] }
 0x1c7   :  { %952 = vmatpush1.bf16.msra.mxu1 %v951_v49  ;;  %v302_v49 = vld [vmem:[#allocation9 + $0x398] sm:$0xff] }
 0x1c8   :  { %954 = vmatprep.subr.bf16.mxu1 %v953_v50  ;;  %v306_v50 = vld [vmem:[#allocation9 + $0x3b8] sm:$0xff] }
 0x1c9   :  { %v993_v52 = vpack.c.bf16 %v306_v50, %v302_v49 }
 0x1cb   :  { %956 = vmatpush1.bf16.msra.mxu1 %v955_v55  ;;  %v310_v55 = vld [vmem:[#allocation9 + $0x3d8] sm:$0xff] }
 0x1cc   :  { %958 = vmatprep.subr.bf16.mxu1 %v957_v56  ;;  %v314_v56 = vld [vmem:[#allocation9 + $0x3f8] sm:$0xff] }
 0x1cd   :  { %v997_v58 = vpack.c.bf16 %v314_v56, %v310_v55  ;;  %v604_v56 = vld [vmem:[#allocation12 + $0x228] sm:$0xff] }
 0x1cf   :  { %960 = vmatpush1.bf16.msra.mxu1 %v959_v61  ;;  %v999_v61 = vpack.c.bf16 %v313_v60, %v309_v59 }
 0x1d0   :  { %962 = vmatprep.subr.bf16.mxu1 %v961_v62  ;;  %v580_v62 = vld [vmem:[#allocation12 + $0x168] sm:$0xff] }
 0x1d1   :  { %v1045_v3 = vpack.c.bf16 %v582_v63, %v580_v62 }
 0x1d3   :  { %964 = vmatpush1.bf16.msra.mxu1 %v963_v8  ;;  %v1047_v8 = vpack.c.bf16 %v581_v6, %v579_v5  ;;  %1046 = vmatprep.subr.bf16.mxu0 %v1045_v3  ;;  %v603_v6 = vld [vmem:[#allocation12 + $0x220] sm:$0xff] }
 0x1d4   :  { %966 = vmatprep.subr.bf16.mxu1 %v965_v11  ;;  %v584_v11 = vld [vmem:[#allocation12 + $0x188] sm:$0xff] }
 0x1d5   :  { %1048 = vmatpush1.bf16.msra.mxu0 %v1047_v8  ;;  %v1049_v13 = vpack.c.bf16 %v586_v12, %v584_v11  ;;  %v605_v8 = vld [vmem:[#allocation12 + $0x230] sm:$0xff] }
 0x1d7   :  { %968 = vmatpush1.bf16.msra.mxu1 %v967_v18  ;;  %v1051_v18 = vpack.c.bf16 %v585_v17, %v583_v16  ;;  %1050 = vmatprep.subr.bf16.mxu0 %v1049_v13  ;;  %v608_v13 = vld [vmem:[#allocation12 + $0x248] sm:$0xff]  ;;  %v610_v16 = vld [vmem:[#allocation12 + $0x258] sm:$0xff] }
 0x1d8   :  { %970 = vmatprep.subr.bf16.mxu1 %v969_v19 }
 0x1d9   :  { %1052 = vmatpush1.bf16.msra.mxu0 %v1051_v18 }
 0x1db   :  { %972 = vmatpush1.bf16.msra.mxu1 %v971_v24  ;;  %v1057_v24 = vpack.c.bf16 %v594_v23, %v592_v1  ;;  %v614_v1 = vld [vmem:[#allocation12 + $0x278] sm:$0xff] }
 0x1dc   :  { %974 = vmatprep.subr.bf16.mxu1 %v973_v25  ;;  %v591_v25 = vld [vmem:[#allocation12 + $0x1c0] sm:$0xff] }
 0x1dd   :  { %v1059_v27 = vpack.c.bf16 %v593_v26, %v591_v25  ;;  %v611_v25 = vld [vmem:[#allocation12 + $0x260] sm:$0xff]  ;;  %v613_v26 = vld [vmem:[#allocation12 + $0x270] sm:$0xff] }
 0x1df   :  { %976 = vmatpush1.bf16.msra.mxu1 %v975_v4  ;;  %v1061_v4 = vpack.c.bf16 %v598_v2, %v596_v28  ;;  %v618_v28 = vld [vmem:[#allocation12 + $0x298] sm:$0xff]  ;;  %v1079_v2 = vpack.c.bf16 %v613_v26, %v611_v25  ;;  %v649_v25 = vld [vmem:[#allocation12 + $0x390] sm:$0xff] }
 0x1e0   :  { %978 = vmatprep.subr.bf16.mxu1 %v977_v30  ;;  %v595_v30 = vld [vmem:[#allocation12 + $0x1e0] sm:$0xff] }
 0x1e1   :  { %v1063_v31 = vpack.c.bf16 %v597_v15, %v595_v30  ;;  %v615_v30 = vld [vmem:[#allocation12 + $0x280] sm:$0xff]  ;;  %v617_v15 = vld [vmem:[#allocation12 + $0x290] sm:$0xff] }
 0x1e3   :  { %980 = vmatpush1.bf16.msra.mxu1 %v979_v14  ;;  %v1065_v14 = vpack.c.bf16 %v602_v33, %v600_v32  ;;  %v622_v32 = vld [vmem:[#allocation12 + $0x2b8] sm:$0xff]  ;;  %v1083_v33 = vpack.c.bf16 %v617_v15, %v615_v30 }
 0x1e4   :  { %982 = vmatprep.subr.bf16.mxu1 %v981_v34  ;;  %v1571_v34 = vld [vmem:[#allocation11] sm:$0xf] }
 0x1e5   :  { %v320_v35 = vrot.slane %v1571_v34, %v1546_v9  ;;  %v324_v36 = vrot.slane %v1571_v34, %v1549_v10 }
 0x1e7   :  { %984 = vmatpush1.bf16.msra.mxu1 %v983_v40 }
 0x1e8   :  { %986 = vmatprep.subr.bf16.mxu1 %v985_v20 }
 0x1eb   :  { %988 = vmatpush1.bf16.msra.mxu1 %v987_v45 }
 0x1ec   :  { %990 = vmatprep.subr.bf16.mxu1 %v989_v46 }
 0x1ef   :  { %992 = vmatpush1.bf16.msra.mxu1 %v991_v51 }
 0x1f0   :  { %994 = vmatprep.subr.bf16.mxu1 %v993_v52  ;;  %v599_v52 = vld [vmem:[#allocation12 + $0x200] sm:$0xff] }
 0x1f3   :  { %996 = vmatpush1.bf16.msra.mxu1 %v995_v57  ;;  %v606_v57 = vld [vmem:[#allocation12 + $0x238] sm:$0xff] }
 0x1f4   :  { %998 = vmatprep.subr.bf16.mxu1 %v997_v58  ;;  %v1069_v5 = vpack.c.bf16 %v606_v57, %v604_v56  ;;  %v638_v56 = vld [vmem:[#allocation12 + $0x338] sm:$0xff] }
 0x1f7   :  { %1000 = vmatpush1.bf16.msra.mxu1 %v999_v61  ;;  %v1067_v61 = vpack.c.bf16 %v601_v53, %v599_v52  ;;  %v631_v53 = vld [vmem:[#allocation12 + $0x300] sm:$0xff] }
 0x1fa   :  { %479 = vmatmul.mubr.f32.vlgmr.msra.gmra.mrb[4].mxu1 %v1557_v29  ;;  %v588_v29 = vld [vmem:[#allocation12 + $0x1a8] sm:$0xff] }
 0x1fb   :  { %484 = vmatprep.mubr.f32.mxu1 %v1562_v37  ;;  %v590_v37 = vld [vmem:[#allocation12 + $0x1b8] sm:$0xff] }
 0x1fc   :  { %v1053_v19 = vpack.c.bf16 %v590_v37, %v588_v29  ;;  %v1071_v29 = vpack.c.bf16 %v605_v8, %v603_v6  ;;  %v641_v6 = vld [vmem:[#allocation12 + $0x350] sm:$0xff]  ;;  %v327_v8 = vsub.s32 2, %v1543_v7 }
 0x1fe   :  { %485 = vmatmul.mubr.f32.gmra.mrb[6].mxu1 %v1564_v38  ;;  %v587_v38 = vld [vmem:[#allocation12 + $0x1a0] sm:$0xff]  ;;  %1054 = vmatprep.subr.bf16.mxu0 %v1053_v19  ;;  %v1073_v19 = vpack.c.bf16 %v610_v16, %v608_v13  ;;  %v331_v13 = vsub.s32 3, %v1543_v7 }
 0x1ff   :  { %v1055_v0 = vpack.c.bf16 %v589_v22, %v587_v38  ;;  %v607_v38 = vld [vmem:[#allocation12 + $0x240] sm:$0xff]  ;;  %v609_v22 = vld [vmem:[#allocation12 + $0x250] sm:$0xff] }
 0x200   :  { %v1075_v23 = vpack.c.bf16 %v609_v22, %v607_v38  ;;  %v650_v38 = vld [vmem:[#allocation12 + $0x398] sm:$0xff]  ;;  %v332_v22 = vrot.slane %v1571_v34, %v331_v13 }
 0x201   :  { %1056 = vmatpush1.bf16.msra.mxu0 %v1055_v0  ;;  %v612_v0 = vld [vmem:[#allocation12 + $0x268] sm:$0xff] }
 0x202   :  { %1058 = vmatprep.subr.bf16.mxu0 %v1057_v24  ;;  %v1077_v24 = vpack.c.bf16 %v614_v1, %v612_v0 }
 0x205   :  { %1060 = vmatpush1.bf16.msra.mxu0 %v1059_v27  ;;  %v616_v27 = vld [vmem:[#allocation12 + $0x288] sm:$0xff] }
 0x206   :  { %1062 = vmatprep.subr.bf16.mxu0 %v1061_v4  ;;  %v1081_v4 = vpack.c.bf16 %v618_v28, %v616_v27  ;;  %v652_v27 = vld [vmem:[#allocation12 + $0x3a8] sm:$0xff]  ;;  %v654_v28 = vld [vmem:[#allocation12 + $0x3b8] sm:$0xff] }
 0x209   :  { %1064 = vmatpush1.bf16.msra.mxu0 %v1063_v31  ;;  %v620_v31 = vld [vmem:[#allocation12 + $0x2a8] sm:$0xff] }
 0x20a   :  { %1066 = vmatprep.subr.bf16.mxu0 %v1065_v14  ;;  %v1085_v14 = vpack.c.bf16 %v622_v32, %v620_v31  ;;  %v1117_v32 = vpack.c.bf16 %v654_v28, %v652_v27 }
 0x28d   :  { %v403_v39 = vpop.f32.mrb[0].mxu1 }
 0x28e   :  { %v404_v21 = vadd.f32 %v403_v39, %v320_v35  ;;  %v405_v40 = vpop.f32.mrb[1].mxu1  ;;  %v624_v39 = vld [vmem:[#allocation12 + $0x2c8] sm:$0xff] }
 0x28f   :  { %v406_v20 = vadd.f32 %v405_v40, %v324_v36 }
 0x290   :  { %v499_v41 = vmul.f32 0.70710677, %v404_v21  ;;  %v491_v58 = vmul.f32 0.5, %v404_v21  ;;  %v626_v21 = vld [vmem:[#allocation12 + $0x2d8] sm:$0xff] }
 0x291   :  { %v500_v42 = vmul.f32 0.70710677, %v406_v20  ;;  %v409_v43 = vpop.f32.mrb[2].mxu1  ;;  %v492_v54 = vmul.f32 0.5, %v406_v20  ;;  %v1089_v20 = vpack.c.bf16 %v626_v21, %v624_v39  ;;  %v658_v39 = vld [vmem:[#allocation12 + $0x3d8] sm:$0xff] }
 0x292   :  { %1149 = verf.f32 %v499_v41  ;;  %v410_v44 = vadd.f32 %v409_v43, %v320_v35  ;;  %v411_v45 = vpop.f32.mrb[3].mxu1  ;;  %v619_v35 = vld [vmem:[#allocation12 + $0x2a0] sm:$0xff]  ;;  %v628_v43 = vld [vmem:[#allocation12 + $0x2e8] sm:$0xff] }
 0x293   :  { %1151 = verf.f32 %v500_v42  ;;  %v412_v46 = vadd.f32 %v411_v45, %v324_v36  ;;  %v621_v36 = vld [vmem:[#allocation12 + $0x2b0] sm:$0xff]  ;;  %v623_v41 = vld [vmem:[#allocation12 + $0x2c0] sm:$0xff] }
 0x294   :  { %v503_v47 = vmul.f32 0.70710677, %v410_v44  ;;  %v495_v17 = vmul.f32 0.5, %v410_v44  ;;  %v1087_v40 = vpack.c.bf16 %v621_v36, %v619_v35  ;;  %v625_v42 = vld [vmem:[#allocation12 + $0x2d0] sm:$0xff]  ;;  %v630_v44 = vld [vmem:[#allocation12 + $0x2f8] sm:$0xff]  ;;  %v656_v36 = vld [vmem:[#allocation12 + $0x3c8] sm:$0xff] }
 0x295   :  { %v504_v48 = vmul.f32 0.70710677, %v412_v46  ;;  %v496_v11 = vmul.f32 0.5, %v412_v46  ;;  %v1091_v45 = vpack.c.bf16 %v625_v42, %v623_v41  ;;  %v1093_v46 = vpack.c.bf16 %v630_v44, %v628_v43  ;;  %v655_v43 = vld [vmem:[#allocation12 + $0x3c0] sm:$0xff]  ;;  %v657_v44 = vld [vmem:[#allocation12 + $0x3d0] sm:$0xff] }
 0x296   :  { %1153 = verf.f32 %v503_v47  ;;  %v627_v47 = vld [vmem:[#allocation12 + $0x2e0] sm:$0xff]  ;;  %v1121_v42 = vpack.c.bf16 %v658_v39, %v656_v36 }
 0x297   :  { %1155 = verf.f32 %v504_v48  ;;  %v629_v48 = vld [vmem:[#allocation12 + $0x2f0] sm:$0xff] }
 0x29c   :  { %v1150_v49 = vpop.eup %1149 }
 0x29d   :  { %v1152_v50 = vpop.eup %1151  ;;  %v515_v51 = vadd.f32 1.0, %v1150_v49  ;;  %v632_v49 = vld [vmem:[#allocation12 + $0x308] sm:$0xff] }
 0x29e   :  { %v516_v55 = vadd.f32 1.0, %v1152_v50  ;;  %v634_v50 = vld [vmem:[#allocation12 + $0x318] sm:$0xff] }
 0x29f   :  { %v523_v3 = vmul.f32 %v515_v51, %v491_v58  ;;  %v1095_v51 = vpack.c.bf16 %v629_v48, %v627_v47  ;;  %v1097_v52 = vpack.c.bf16 %v634_v50, %v632_v49  ;;  %v1123_v47 = vpack.c.bf16 %v657_v44, %v655_v43  ;;  %v659_v49 = vld [vmem:[#allocation12 + $0x3e0] sm:$0xff]  ;;  %v661_v50 = vld [vmem:[#allocation12 + $0x3f0] sm:$0xff] }
 0x2a0   :  { %v1154_v59 = vpop.eup %1153  ;;  %v524_v60 = vmul.f32 %v516_v55, %v492_v54  ;;  %v633_v54 = vld [vmem:[#allocation12 + $0x310] sm:$0xff]  ;;  %v636_v55 = vld [vmem:[#allocation12 + $0x328] sm:$0xff] }
 0x2a1   :  { %v1156_v62 = vpop.eup %1155  ;;  %v519_v63 = vadd.f32 1.0, %v1154_v59  ;;  %v1099_v57 = vpack.c.bf16 %v633_v54, %v631_v53  ;;  %v1101_v58 = vpack.c.bf16 %v638_v56, %v636_v55  ;;  %v635_v59 = vld [vmem:[#allocation12 + $0x320] sm:$0xff] }
 0x2a2   :  { %v520_v12 = vadd.f32 1.0, %v1156_v62  ;;  %727 = vmatprep.mubr.f32.mxu0 %v524_v60  ;;  %v637_v60 = vld [vmem:[#allocation12 + $0x330] sm:$0xff]  ;;  %v642_v62 = vld [vmem:[#allocation12 + $0x358] sm:$0xff] }
 0x2a3   :  { %728 = vmatmul.mubr.f32.vlgmr.msra.gmra.mrb[0].mxu0 %v523_v3  ;;  %v527_v37 = vmul.f32 %v519_v63, %v495_v17  ;;  %v1103_v63 = vpack.c.bf16 %v637_v60, %v635_v59 }
 0x2a4   :  { %1068 = vmatpush1.bf16.msra.mxu0 %v1067_v61  ;;  %v528_v18 = vmul.f32 %v520_v12, %v496_v11  ;;  %v640_v61 = vld [vmem:[#allocation12 + $0x348] sm:$0xff]  ;;  %v646_v12 = vld [vmem:[#allocation12 + $0x378] sm:$0xff] }
 0x2a5   :  { %1070 = vmatprep.subr.bf16.mxu0 %v1069_v5  ;;  %v1105_v3 = vpack.c.bf16 %v642_v62, %v640_v61  ;;  %v639_v5 = vld [vmem:[#allocation12 + $0x340] sm:$0xff]  ;;  %v644_v11 = vld [vmem:[#allocation12 + $0x368] sm:$0xff] }
 0x2a6   :  { %733 = vmatprep.mubr.f32.mxu0 %v528_v18  ;;  %v1107_v16 = vpack.c.bf16 %v641_v6, %v639_v5  ;;  %v1109_v17 = vpack.c.bf16 %v646_v12, %v644_v11  ;;  %v643_v18 = vld [vmem:[#allocation12 + $0x360] sm:$0xff] }
 0x2a7   :  { %734 = vmatmul.mubr.f32.gmra.mrb[2].mxu0 %v527_v37  ;;  %v328_v37 = vrot.slane %v1571_v34, %v327_v8  ;;  %v651_v34 = vld [vmem:[#allocation12 + $0x3a0] sm:$0xff] }
 0x2a8   :  { %1072 = vmatpush1.bf16.msra.mxu0 %v1071_v29  ;;  %v645_v29 = vld [vmem:[#allocation12 + $0x370] sm:$0xff]  ;;  %v833_v11 = vld [vmem:[#allocation14] sm:$0x3] }
 0x2a9   :  { %1074 = vmatprep.subr.bf16.mxu0 %v1073_v19  ;;  %v648_v19 = vld [vmem:[#allocation12 + $0x388] sm:$0xff]  ;;  %v1111_v0 = vpack.c.bf16 %v645_v29, %v643_v18  ;;  %v838_v12 = vrot.slane %v833_v11, %v1546_v9 }
 0x2ac   :  { %1076 = vmatpush1.bf16.msra.mxu0 %v1075_v23  ;;  %v1113_v23 = vpack.c.bf16 %v650_v38, %v648_v19 }
 0x2ad   :  { %1078 = vmatprep.subr.bf16.mxu0 %v1077_v24  ;;  %v647_v24 = vld [vmem:[#allocation12 + $0x380] sm:$0xff] }
 0x2ae   :  { %v1115_v30 = vpack.c.bf16 %v649_v25, %v647_v24  ;;  %v1168_v25 = vld [vmem:[#allocation3 + $0x18] sm:$0xff] }
 0x2b0   :  { %1080 = vmatpush1.bf16.msra.mxu0 %v1079_v2 }
 0x2b1   :  { %1082 = vmatprep.subr.bf16.mxu0 %v1081_v4 }
 0x2b4   :  { %1084 = vmatpush1.bf16.msra.mxu0 %v1083_v33  ;;  %v653_v33 = vld [vmem:[#allocation12 + $0x3b0] sm:$0xff] }
 0x2b5   :  { %1086 = vmatprep.subr.bf16.mxu0 %v1085_v14 }
 0x2b8   :  { %1088 = vmatpush1.bf16.msra.mxu0 %v1087_v40 }
 0x2b9   :  { %1090 = vmatprep.subr.bf16.mxu0 %v1089_v20  ;;  %v1119_v20 = vpack.c.bf16 %v653_v33, %v651_v34 }
 0x2bc   :  { %1092 = vmatpush1.bf16.msra.mxu0 %v1091_v45  ;;  %v660_v45 = vld [vmem:[#allocation12 + $0x3e8] sm:$0xff] }
 0x2bd   :  { %1094 = vmatprep.subr.bf16.mxu0 %v1093_v46  ;;  %v662_v46 = vld [vmem:[#allocation12 + $0x3f8] sm:$0xff] }
 0x2be   :  { %v1125_v48 = vpack.c.bf16 %v662_v46, %v660_v45 }
 0x2c0   :  { %1096 = vmatpush1.bf16.msra.mxu0 %v1095_v51 }
 0x2c1   :  { %1098 = vmatprep.subr.bf16.mxu0 %v1097_v52  ;;  %v1127_v52 = vpack.c.bf16 %v661_v50, %v659_v49 }
 0x2c4   :  { %1100 = vmatpush1.bf16.msra.mxu0 %v1099_v57 }
 0x2c5   :  { %1102 = vmatprep.subr.bf16.mxu0 %v1101_v58 }
 0x2c8   :  { %1104 = vmatpush1.bf16.msra.mxu0 %v1103_v63 }
 0x2c9   :  { %1106 = vmatprep.subr.bf16.mxu0 %v1105_v3 }
 0x2cc   :  { %1108 = vmatpush1.bf16.msra.mxu0 %v1107_v16  ;;  %v842_v16 = vrot.slane %v833_v11, %v1549_v10 }
 0x2cd   :  { %v480_v1 = vpop.f32.mrb[4].mxu1  ;;  %1110 = vmatprep.subr.bf16.mxu0 %v1109_v17  ;;  %v1165_v17 = vld [vmem:[#allocation3] sm:$0xff] }
 0x2ce   :  { %v481_v7 = vadd.f32 %v480_v1, %v328_v37  ;;  %v482_v26 = vpop.f32.mrb[5].mxu1  ;;  %v1167_v1 = vld [vmem:[#allocation3 + $0x10] sm:$0xff] }
 0x2cf   :  { %v483_v2 = vadd.f32 %v482_v26, %v332_v22 }
 0x2d0   :  { %v501_v4 = vmul.f32 0.70710677, %v481_v7  ;;  %1112 = vmatpush1.bf16.msra.mxu0 %v1111_v0  ;;  %v493_v57 = vmul.f32 0.5, %v481_v7 }
 0x2d1   :  { %v502_v15 = vmul.f32 0.70710677, %v483_v2  ;;  %v486_v31 = vpop.f32.mrb[6].mxu1  ;;  %1114 = vmatprep.subr.bf16.mxu0 %v1113_v23  ;;  %v494_v55 = vmul.f32 0.5, %v483_v2 }
 0x2d2   :  { %1157 = verf.f32 %v501_v4  ;;  %v487_v14 = vadd.f32 %v486_v31, %v328_v37  ;;  %v488_v35 = vpop.f32.mrb[7].mxu1  ;;  %v1166_v37 = vld [vmem:[#allocation3 + $0x8] sm:$0xff] }
 0x2d3   :  { %1159 = verf.f32 %v502_v15  ;;  %v489_v21 = vadd.f32 %v488_v35, %v332_v22 }
 0x2d4   :  { %v505_v40 = vmul.f32 0.70710677, %v487_v14  ;;  %1116 = vmatpush1.bf16.msra.mxu0 %v1115_v30  ;;  %v497_v5 = vmul.f32 0.5, %v487_v14 }
 0x2d5   :  { %v506_v41 = vmul.f32 0.70710677, %v489_v21  ;;  %1118 = vmatprep.subr.bf16.mxu0 %v1117_v32  ;;  %v498_v63 = vmul.f32 0.5, %v489_v21 }
 0x2d6   :  { %1161 = verf.f32 %v505_v40 }
 0x2d7   :  { %1163 = verf.f32 %v506_v41 }
 0x2d8   :  { %1120 = vmatpush1.bf16.msra.mxu0 %v1119_v20 }
 0x2d9   :  { %1122 = vmatprep.subr.bf16.mxu0 %v1121_v42 }
 0x2dc   :  { %v1158_v51 = vpop.eup %1157  ;;  %1124 = vmatpush1.bf16.msra.mxu0 %v1123_v47 }
 0x2dd   :  { %v1160_v53 = vpop.eup %1159  ;;  %v517_v54 = vadd.f32 1.0, %v1158_v51  ;;  %1126 = vmatprep.subr.bf16.mxu0 %v1125_v48 }
 0x2de   :  { %v518_v56 = vadd.f32 1.0, %v1160_v53 }
 0x2df   :  { %v525_v61 = vmul.f32 %v517_v54, %v493_v57 }
 0x2e0   :  { %v1162_v58 = vpop.eup %1161  ;;  %1128 = vmatpush1.bf16.msra.mxu0 %v1127_v52  ;;  %v526_v59 = vmul.f32 %v518_v56, %v494_v55 }
 0x2e1   :  { %v1164_v60 = vpop.eup %1163  ;;  %v521_v62 = vadd.f32 1.0, %v1162_v58 }
 0x2e2   :  { %v522_v3 = vadd.f32 1.0, %v1164_v60  ;;  %804 = vmatprep.mubr.f32.mxu0 %v526_v59 }
 0x2e3   :  { %805 = vmatmul.mubr.f32.vlgmr.msra.gmra.mrb[0].mxu0 %v525_v61  ;;  %v529_v8 = vmul.f32 %v521_v62, %v497_v5 }
 0x2e4   :  { %v530_v6 = vmul.f32 %v522_v3, %v498_v63 }
 0x2e6   :  { %810 = vmatprep.mubr.f32.mxu0 %v530_v6 }
 0x2e7   :  { %811 = vmatmul.mubr.f32.gmra.mrb[2].mxu0 %v529_v8 }
 0x3b6   :  { %v806_v13 = vpop.f32.mrb[0].mxu0 }
 0x3b7   :  { %v829_v18 = vadd.f32 %v1165_v17, %v806_v13  ;;  %v808_v29 = vpop.f32.mrb[1].mxu0 }
 0x3b8   :  { %v830_v19 = vadd.f32 %v1166_v37, %v808_v29 }
 0x3b9   :  { %v845_v38 = vadd.f32 %v838_v12, %v829_v18 }
 0x3ba   :  { %v846_v22 = vadd.f32 %v842_v16, %v830_v19  ;;  %v812_v0 = vpop.f32.mrb[2].mxu0 }
 0x3bb   :  { %849 = vst [vmem:[#allocation15] sm:$0xff] %v845_v38  ;;  %v831_v23 = vadd.f32 %v1167_v1, %v812_v0  ;;  %v814_v24 = vpop.f32.mrb[3].mxu0 }
 0x3bc   :  { %850 = vst [vmem:[#allocation15 + $0x8] sm:$0xff] %v846_v22  ;;  %v832_v9 = vadd.f32 %v1168_v25, %v814_v24 }
 0x3bd   :  { %v847_v7 = vadd.f32 %v838_v12, %v831_v23 }
 0x3be   :  { %v848_v26 = vadd.f32 %v842_v16, %v832_v9 }
 0x3bf   :  { %851 = vst [vmem:[#allocation15 + $0x10] sm:$0xff] %v847_v7 }
 0x3c0   :  { %852 = vst [vmem:[#allocation15 + $0x18] sm:$0xff] %v848_v26 }
 0x3c1   :  { %1334 = shalt.err (!%p1331_p4)
}
 0x3c2   :  { %s1335_s16 = scalar_lea.hbm %s1605_s7, 512 }
 0x3c3   :  { %p1336_p5 = scmp.ne.s32.totalorder %s1605_s7, %s1335_s16  ;;  %p1339_p6 = scmp.lt.u32.totalorder %s1335_s16, %s1605_s7 }
 0x3c5   :  { %p1341_p7 = pnand %p1339_p6, %p1336_p5 }
 0x3c7   :  { %1344 = shalt.err (!%p1341_p7)
}
 0x3c8   :  { %864 = dma.vmem_to_hbm [thread:$0]  %s859_s14, 512, %s1605_s7, [#allocation5], %s1361_s27, %s1361_s27, %s1362_s15  }
 0x3c9   :  { %1353 = dma.done.wait [#allocation5], 512  }
 0x3ca   :  { %1354 = vsyncadd [#allocation5], 4294966784 }
 0x3cb   :  { %868 = vsyncpa [#allocation4], 1 }
 0x3cc   :  { %869 = vsyncpa [#allocation7], 1 }
 0x3cd   :  { %870 = vsyncpa [#allocation10], 1 }
 0x3ce   :  { %871 = vsyncpa [#allocation13], 1 }
 0x3cf   :  { %872 = vsyncpa [#allocation5], 1 }

</bundles_post_ra>
